<compile_context>
chip_gen: v6e
topology: v6e:2x2x1
jax: 0.10.0
libtpu: 0.0.40
codegen_flags: <defaults>
</compile_context>

<pallas_src>
import math
import functools

import jax
import jax.numpy as jnp
from jax import lax
from jax.experimental import pallas as pl
from jax.experimental.pallas import tpu as pltpu

INPUT_SIZE = 4 * 3     # 12
HIDDEN = 12
NUM_LAYERS = 2


# ----------------------------------------------------------------------------- kernel
def lstm_recurrence_kernel(xp_ref, whh_ref, out_ref):
    """Sequential LSTM recurrence for one direction (selected by grid axis 0).

    xp_ref  : (T, B, 4H) f32  precomputed x_t @ W_ih + (b_ih + b_hh), gates (i,f,o,g)
    whh_ref : (H, 4H)    f32  hidden->gate weights, gates (i,f,o,g)
    out_ref : (T, B, H)  f32  hidden states h_t for this direction
    """
    T, B, _ = xp_ref.shape
    H = whh_ref.shape[0]
    rev = pl.program_id(0) == 1          # dir 0 = forward, dir 1 = backward

    whh = whh_ref[...]                   # (H, 4H), vreg-resident for the whole loop

    def step(s, carry):
        h_prev, c_prev = carry
        t = jnp.where(rev, T - 1 - s, s)                       # time index this step
        # single matmul on the recurrence critical path
        gates = xp_ref[t] + jnp.dot(h_prev, whh,
                                    preferred_element_type=jnp.float32)  # (B, 4H)
        sig = jax.nn.sigmoid(gates[:, : 3 * H])                # i, f, o in one pass
        g = jnp.tanh(gates[:, 3 * H:])
        i = sig[:, :H]
        f = sig[:, H: 2 * H]
        o = sig[:, 2 * H: 3 * H]
        c = f * c_prev + i * g
        h = o * jnp.tanh(c)
        out_ref[t] = h.astype(out_ref.dtype)
        return (h, c)

    zeros = jnp.zeros((B, H), jnp.float32)
    lax.fori_loop(0, T, step, (zeros, zeros), unroll=True)


# ------------------------------------------------------------------------ layer wrapper
def bilstm_layer(x_tbd, wih, whh, b):
    """One bidirectional layer.

    x_tbd: (T, B, D); wih: (2, D, 4H); whh: (2, H, 4H); b: (2, 1, 1, 4H)
    returns (T, B, 2H).
    """
    T, B, _ = x_tbd.shape
    H = whh.shape[1]
    G = 4 * H

    # Input projection for BOTH directions, hoisted out of the recurrence
    # (one batched matmul, bias folded in).
    xp = jnp.einsum("tbd,edg->etbg", x_tbd, wih,
                    preferred_element_type=jnp.float32) + b    # (2, T, B, 4H)

    out = pl.pallas_call(
        lstm_recurrence_kernel,
        out_shape=jax.ShapeDtypeStruct((2, T, B, H), jnp.float32),
        grid=(2,),
        in_specs=[
            pl.BlockSpec((None, T, B, G), lambda d: (d, 0, 0, 0)),
            pl.BlockSpec((None, H, G), lambda d: (d, 0, 0)),
        ],
        out_specs=pl.BlockSpec((None, T, B, H), lambda d: (d, 0, 0, 0)),
        compiler_params=pltpu.CompilerParams(
            dimension_semantics=("parallel",)),   # fwd/bwd on separate TCs on v7x
    )(xp, whh)

    return jnp.concatenate([out[0], out[1]], axis=-1)          # (T, B, 2H)


# --------------------------------------------------------------------------- forward
@jax.jit
def bilstm_forward(x, packed_params):
    """x: (B, T, C, F) -> (B, T, 2*hidden), matching PyTorch BiLSTM.forward."""
    B, T = x.shape[0], x.shape[1]
    x = x.reshape(B, T, -1).astype(jnp.float32)        # flatten(2)
    inp = jnp.transpose(x, (1, 0, 2))                  # (T, B, D) time-major
    for layer in packed_params:
        inp = bilstm_layer(inp, layer["wih"], layer["whh"], layer["b"])
    return jnp.transpose(inp, (1, 0, 2))               # (B, T, 2H)


# ---------------------------------------------------------------- weight packing (once)
def _reorder_gates(w, hidden):
    """PyTorch gate order (i, f, g, o) along axis 0 -> (i, f, o, g)."""
    wi, wf, wg, wo = jnp.split(w, 4, axis=0)
    return jnp.concatenate([wi, wf, wo, wg], axis=0)


def pack_params(params, hidden=HIDDEN):
    """Pre-pack PyTorch-layout weights once, outside the per-call path."""
    packed = []
    for p in params:
        wih_l, whh_l, b_l = [], [], []
        for s in ("f", "r"):
            wih_l.append(_reorder_gates(p[f"w_ih_{s}"], hidden).T)      # (D, 4H)
            whh_l.append(_reorder_gates(p[f"w_hh_{s}"], hidden).T)      # (H, 4H)
            b_l.append(_reorder_gates(p[f"b_ih_{s}"] + p[f"b_hh_{s}"], hidden))
        packed.append({
            "wih": jnp.stack(wih_l, 0),                                 # (2, D, 4H)
            "whh": jnp.stack(whh_l, 0),                                 # (2, H, 4H)
            "b": jnp.stack(b_l, 0)[:, None, None, :],                   # (2, 1, 1, 4H)
        })
    return packed


# ------------------------------------------------------------------- param init (det.)
def init_params(key, input_size=INPUT_SIZE, hidden=HIDDEN, num_layers=NUM_LAYERS):
    """Deterministic synthetic params with PyTorch nn.LSTM shapes & init range."""
    k = 1.0 / math.sqrt(hidden)
    params = []
    for l in range(num_layers):
        d_in = input_size if l == 0 else 2 * hidden
        layer = {}
        for suffix, din in (("f", d_in), ("r", d_in)):
            key, k1, k2, k3, k4 = jax.random.split(key, 5)
            layer[f"w_ih_{suffix}"] = jax.random.uniform(
                k1, (4 * hidden, din), jnp.float32, -k, k)
            layer[f"w_hh_{suffix}"] = jax.random.uniform(
                k2, (4 * hidden, hidden), jnp.float32, -k, k)
            layer[f"b_ih_{suffix}"] = jax.random.uniform(
                k3, (4 * hidden,), jnp.float32, -k, k)
            layer[f"b_hh_{suffix}"] = jax.random.uniform(
                k4, (4 * hidden,), jnp.float32, -k, k)
        params.append(layer)
    return params


# ------------------------------------------------------------------ pure-JAX reference
def lstm_dir_ref(x_tbd, w_ih, w_hh, b_ih, b_hh, hidden):
    def step(carry, x_t):
        h, c = carry
        gates = x_t @ w_ih.T + h @ w_hh.T + b_ih + b_hh
        i = jax.nn.sigmoid(gates[:, 0 * hidden:1 * hidden])
        f = jax.nn.sigmoid(gates[:, 1 * hidden:2 * hidden])
        g = jnp.tanh(gates[:, 2 * hidden:3 * hidden])
        o = jax.nn.sigmoid(gates[:, 3 * hidden:4 * hidden])
        c = f * c + i * g
        h = o * jnp.tanh(c)
        return (h, c), h

    B = x_tbd.shape[1]
    init = (jnp.zeros((B, hidden), jnp.float32), jnp.zeros((B, hidden), jnp.float32))
    _, hs = lax.scan(step, init, x_tbd)
    return hs


def bilstm_ref(x, params, hidden=HIDDEN, num_layers=NUM_LAYERS):
    B, T = x.shape[0], x.shape[1]
    x = x.reshape(B, T, -1).astype(jnp.float32)
    inp = jnp.transpose(x, (1, 0, 2))
    for l in range(num_layers):
        p = params[l]
        fwd = lstm_dir_ref(inp, p["w_ih_f"], p["w_hh_f"], p["b_ih_f"], p["b_hh_f"], hidden)
        bwd = lstm_dir_ref(inp[::-1], p["w_ih_r"], p["w_hh_r"],
                           p["b_ih_r"], p["b_hh_r"], hidden)[::-1]
        inp = jnp.concatenate([fwd, bwd], axis=-1)
    return jnp.transpose(inp, (1, 0, 2))


# --------------------------------------------------------------------------------- main
if __name__ == "__main__":
    key = jax.random.PRNGKey(0)
    key, pkey, xkey = jax.random.split(key, 3)

    B, T, C, F = 2, 8, 4, 3          # flatten(2) -> D = 12 = input_size
    x = jax.random.normal(xkey, (B, T, C, F), jnp.float32)
    params = init_params(pkey)
    packed = pack_params(params)      # one-time weight packing

    out = bilstm_forward(x, packed)
    out = jax.block_until_ready(out)

    assert out.shape == (B, T, 2 * HIDDEN), out.shape

    ref = jax.block_until_ready(bilstm_ref(x, params))
    assert jnp.allclose(out, ref, rtol=1e-3, atol=1e-3), \
        f"max abs err {jnp.max(jnp.abs(out - ref))}"

    print("KERNEL_OK")
</pallas_src>

<mosaic_0001>
module attributes {stable_mosaic.version = 11 : i64} {
  func.func @lstm_recurrence_kernel(%arg0: i32, %arg1: memref<1x8x2x48xf32, #tpu.memory_space<vmem>>, %arg2: memref<1x12x48xf32, #tpu.memory_space<vmem>>, %arg3: memref<1x8x2x12xf32, #tpu.memory_space<vmem>>) attributes {dimension_semantics = [#tpu.dimension_semantics<parallel>], iteration_bounds = array<i64: 2>, scalar_prefetch = 0 : i64, scratch_operands = 0 : i64, tpu.core_type = #tpu.core_type<tc>, window_params = [{transform_indices = @transform_0, window_bounds = array<i64: 1, 8, 2, 48>}, {transform_indices = @transform_1, window_bounds = array<i64: 1, 12, 48>}, {transform_indices = @transform_2, window_bounds = array<i64: 1, 8, 2, 12>}]} {
    %c1_i32 = arith.constant 1 : i32
    %0 = arith.cmpi eq, %arg0, %c1_i32 : i32
    %c0 = arith.constant 0 : index
    %c0_0 = arith.constant 0 : index
    %c0_1 = arith.constant 0 : index
    %1 = vector.load %arg2[%c0, %c0_0, %c0_1] : memref<1x12x48xf32, #tpu.memory_space<vmem>>, vector<1x12x48xf32>
    %2 = vector.shape_cast %1 : vector<1x12x48xf32> to vector<12x48xf32>
    %cst = arith.constant 0.000000e+00 : f32
    %3 = vector.broadcast %cst : f32 to vector<2x12xf32>
    %c0_i32 = arith.constant 0 : i32
    %c7_i32 = arith.constant 7 : i32
    %4 = arith.subi %c7_i32, %c0_i32 : i32
    %5 = arith.select %0, %4, %c0_i32 : i32
    %c0_2 = arith.constant 0 : index
    %6 = arith.index_cast %5 : i32 to index
    %c0_3 = arith.constant 0 : index
    %c0_4 = arith.constant 0 : index
    %7 = vector.load %arg1[%c0_2, %6, %c0_3, %c0_4] : memref<1x8x2x48xf32, #tpu.memory_space<vmem>>, vector<1x1x2x48xf32>
    %8 = vector.shape_cast %7 : vector<1x1x2x48xf32> to vector<2x48xf32>
    %cst_5 = arith.constant dense<0.000000e+00> : vector<2x48xf32>
    %9 = tpu.matmul %3, %2, %cst_5 {dimension_numbers = #tpu.dot_dimension_numbers<[1], [0], [0], [1], [0, 0, 1, 1], [], []>} : vector<2x12xf32>, vector<12x48xf32>, vector<2x48xf32> -> vector<2x48xf32>
    %10 = arith.addf %8, %9 : vector<2x48xf32>
    %11 = vector.extract_strided_slice %10 {offsets = [0, 0], sizes = [2, 36], strides = [1, 1]} : vector<2x48xf32> to vector<2x36xf32>
    %12 = arith.negf %11 : vector<2x36xf32>
    %13 = math.exp %12 : vector<2x36xf32>
    %cst_6 = arith.constant 1.000000e+00 : f32
    %14 = vector.broadcast %cst_6 : f32 to vector<2x36xf32>
    %15 = arith.addf %14, %13 : vector<2x36xf32>
    %16 = arith.divf %14, %15 : vector<2x36xf32>
    %17 = vector.extract_strided_slice %10 {offsets = [0, 36], sizes = [2, 12], strides = [1, 1]} : vector<2x48xf32> to vector<2x12xf32>
    %18 = math.tanh %17 : vector<2x12xf32>
    %19 = vector.extract_strided_slice %16 {offsets = [0, 0], sizes = [2, 12], strides = [1, 1]} : vector<2x36xf32> to vector<2x12xf32>
    %20 = vector.extract_strided_slice %16 {offsets = [0, 12], sizes = [2, 12], strides = [1, 1]} : vector<2x36xf32> to vector<2x12xf32>
    %21 = vector.extract_strided_slice %16 {offsets = [0, 24], sizes = [2, 12], strides = [1, 1]} : vector<2x36xf32> to vector<2x12xf32>
    %22 = arith.mulf %20, %3 : vector<2x12xf32>
    %23 = arith.mulf %19, %18 : vector<2x12xf32>
    %24 = arith.addf %22, %23 : vector<2x12xf32>
    %25 = math.tanh %24 : vector<2x12xf32>
    %26 = arith.mulf %21, %25 : vector<2x12xf32>
    %c0_7 = arith.constant 0 : index
    %27 = arith.index_cast %5 : i32 to index
    %c0_8 = arith.constant 0 : index
    %c0_9 = arith.constant 0 : index
    %28 = vector.load %arg3[%c0_7, %27, %c0_8, %c0_9] : memref<1x8x2x12xf32, #tpu.memory_space<vmem>>, vector<1x1x2x12xf32>
    %29 = vector.shape_cast %28 : vector<1x1x2x12xf32> to vector<2x12xf32>
    %30 = vector.shape_cast %26 : vector<2x12xf32> to vector<1x1x2x12xf32>
    tpu.vector_store %arg3[%c0_7, %27, %c0_8, %c0_9], %30 {strides = array<i32>} : memref<1x8x2x12xf32, #tpu.memory_space<vmem>>, vector<1x1x2x12xf32>,
    %c1_i32_10 = arith.constant 1 : i32
    %c7_i32_11 = arith.constant 7 : i32
    %31 = arith.subi %c7_i32_11, %c1_i32_10 : i32
    %32 = arith.select %0, %31, %c1_i32_10 : i32
    %c0_12 = arith.constant 0 : index
    %33 = arith.index_cast %32 : i32 to index
    %c0_13 = arith.constant 0 : index
    %c0_14 = arith.constant 0 : index
    %34 = vector.load %arg1[%c0_12, %33, %c0_13, %c0_14] : memref<1x8x2x48xf32, #tpu.memory_space<vmem>>, vector<1x1x2x48xf32>
    %35 = vector.shape_cast %34 : vector<1x1x2x48xf32> to vector<2x48xf32>
    %cst_15 = arith.constant dense<0.000000e+00> : vector<2x48xf32>
    %36 = tpu.matmul %26, %2, %cst_15 {dimension_numbers = #tpu.dot_dimension_numbers<[1], [0], [0], [1], [0, 0, 1, 1], [], []>} : vector<2x12xf32>, vector<12x48xf32>, vector<2x48xf32> -> vector<2x48xf32>
    %37 = arith.addf %35, %36 : vector<2x48xf32>
    %38 = vector.extract_strided_slice %37 {offsets = [0, 0], sizes = [2, 36], strides = [1, 1]} : vector<2x48xf32> to vector<2x36xf32>
    %39 = arith.negf %38 : vector<2x36xf32>
    %40 = math.exp %39 : vector<2x36xf32>
    %cst_16 = arith.constant 1.000000e+00 : f32
    %41 = vector.broadcast %cst_16 : f32 to vector<2x36xf32>
    %42 = arith.addf %41, %40 : vector<2x36xf32>
    %43 = arith.divf %41, %42 : vector<2x36xf32>
    %44 = vector.extract_strided_slice %37 {offsets = [0, 36], sizes = [2, 12], strides = [1, 1]} : vector<2x48xf32> to vector<2x12xf32>
    %45 = math.tanh %44 : vector<2x12xf32>
    %46 = vector.extract_strided_slice %43 {offsets = [0, 0], sizes = [2, 12], strides = [1, 1]} : vector<2x36xf32> to vector<2x12xf32>
    %47 = vector.extract_strided_slice %43 {offsets = [0, 12], sizes = [2, 12], strides = [1, 1]} : vector<2x36xf32> to vector<2x12xf32>
    %48 = vector.extract_strided_slice %43 {offsets = [0, 24], sizes = [2, 12], strides = [1, 1]} : vector<2x36xf32> to vector<2x12xf32>
    %49 = arith.mulf %47, %24 : vector<2x12xf32>
    %50 = arith.mulf %46, %45 : vector<2x12xf32>
    %51 = arith.addf %49, %50 : vector<2x12xf32>
    %52 = math.tanh %51 : vector<2x12xf32>
    %53 = arith.mulf %48, %52 : vector<2x12xf32>
    %c0_17 = arith.constant 0 : index
    %54 = arith.index_cast %32 : i32 to index
    %c0_18 = arith.constant 0 : index
    %c0_19 = arith.constant 0 : index
    %55 = vector.load %arg3[%c0_17, %54, %c0_18, %c0_19] : memref<1x8x2x12xf32, #tpu.memory_space<vmem>>, vector<1x1x2x12xf32>
    %56 = vector.shape_cast %55 : vector<1x1x2x12xf32> to vector<2x12xf32>
    %57 = vector.shape_cast %53 : vector<2x12xf32> to vector<1x1x2x12xf32>
    tpu.vector_store %arg3[%c0_17, %54, %c0_18, %c0_19], %57 {strides = array<i32>} : memref<1x8x2x12xf32, #tpu.memory_space<vmem>>, vector<1x1x2x12xf32>,
    %c2_i32 = arith.constant 2 : i32
    %c7_i32_20 = arith.constant 7 : i32
    %58 = arith.subi %c7_i32_20, %c2_i32 : i32
    %59 = arith.select %0, %58, %c2_i32 : i32
    %c0_21 = arith.constant 0 : index
    %60 = arith.index_cast %59 : i32 to index
    %c0_22 = arith.constant 0 : index
    %c0_23 = arith.constant 0 : index
    %61 = vector.load %arg1[%c0_21, %60, %c0_22, %c0_23] : memref<1x8x2x48xf32, #tpu.memory_space<vmem>>, vector<1x1x2x48xf32>
    %62 = vector.shape_cast %61 : vector<1x1x2x48xf32> to vector<2x48xf32>
    %cst_24 = arith.constant dense<0.000000e+00> : vector<2x48xf32>
    %63 = tpu.matmul %53, %2, %cst_24 {dimension_numbers = #tpu.dot_dimension_numbers<[1], [0], [0], [1], [0, 0, 1, 1], [], []>} : vector<2x12xf32>, vector<12x48xf32>, vector<2x48xf32> -> vector<2x48xf32>
    %64 = arith.addf %62, %63 : vector<2x48xf32>
    %65 = vector.extract_strided_slice %64 {offsets = [0, 0], sizes = [2, 36], strides = [1, 1]} : vector<2x48xf32> to vector<2x36xf32>
    %66 = arith.negf %65 : vector<2x36xf32>
    %67 = math.exp %66 : vector<2x36xf32>
    %cst_25 = arith.constant 1.000000e+00 : f32
    %68 = vector.broadcast %cst_25 : f32 to vector<2x36xf32>
    %69 = arith.addf %68, %67 : vector<2x36xf32>
    %70 = arith.divf %68, %69 : vector<2x36xf32>
    %71 = vector.extract_strided_slice %64 {offsets = [0, 36], sizes = [2, 12], strides = [1, 1]} : vector<2x48xf32> to vector<2x12xf32>
    %72 = math.tanh %71 : vector<2x12xf32>
    %73 = vector.extract_strided_slice %70 {offsets = [0, 0], sizes = [2, 12], strides = [1, 1]} : vector<2x36xf32> to vector<2x12xf32>
    %74 = vector.extract_strided_slice %70 {offsets = [0, 12], sizes = [2, 12], strides = [1, 1]} : vector<2x36xf32> to vector<2x12xf32>
    %75 = vector.extract_strided_slice %70 {offsets = [0, 24], sizes = [2, 12], strides = [1, 1]} : vector<2x36xf32> to vector<2x12xf32>
    %76 = arith.mulf %74, %51 : vector<2x12xf32>
    %77 = arith.mulf %73, %72 : vector<2x12xf32>
    %78 = arith.addf %76, %77 : vector<2x12xf32>
    %79 = math.tanh %78 : vector<2x12xf32>
    %80 = arith.mulf %75, %79 : vector<2x12xf32>
    %c0_26 = arith.constant 0 : index
    %81 = arith.index_cast %59 : i32 to index
    %c0_27 = arith.constant 0 : index
    %c0_28 = arith.constant 0 : index
    %82 = vector.load %arg3[%c0_26, %81, %c0_27, %c0_28] : memref<1x8x2x12xf32, #tpu.memory_space<vmem>>, vector<1x1x2x12xf32>
    %83 = vector.shape_cast %82 : vector<1x1x2x12xf32> to vector<2x12xf32>
    %84 = vector.shape_cast %80 : vector<2x12xf32> to vector<1x1x2x12xf32>
    tpu.vector_store %arg3[%c0_26, %81, %c0_27, %c0_28], %84 {strides = array<i32>} : memref<1x8x2x12xf32, #tpu.memory_space<vmem>>, vector<1x1x2x12xf32>,
    %c3_i32 = arith.constant 3 : i32
    %c7_i32_29 = arith.constant 7 : i32
    %85 = arith.subi %c7_i32_29, %c3_i32 : i32
    %86 = arith.select %0, %85, %c3_i32 : i32
    %c0_30 = arith.constant 0 : index
    %87 = arith.index_cast %86 : i32 to index
    %c0_31 = arith.constant 0 : index
    %c0_32 = arith.constant 0 : index
    %88 = vector.load %arg1[%c0_30, %87, %c0_31, %c0_32] : memref<1x8x2x48xf32, #tpu.memory_space<vmem>>, vector<1x1x2x48xf32>
    %89 = vector.shape_cast %88 : vector<1x1x2x48xf32> to vector<2x48xf32>
    %cst_33 = arith.constant dense<0.000000e+00> : vector<2x48xf32>
    %90 = tpu.matmul %80, %2, %cst_33 {dimension_numbers = #tpu.dot_dimension_numbers<[1], [0], [0], [1], [0, 0, 1, 1], [], []>} : vector<2x12xf32>, vector<12x48xf32>, vector<2x48xf32> -> vector<2x48xf32>
    %91 = arith.addf %89, %90 : vector<2x48xf32>
    %92 = vector.extract_strided_slice %91 {offsets = [0, 0], sizes = [2, 36], strides = [1, 1]} : vector<2x48xf32> to vector<2x36xf32>
    %93 = arith.negf %92 : vector<2x36xf32>
    %94 = math.exp %93 : vector<2x36xf32>
    %cst_34 = arith.constant 1.000000e+00 : f32
    %95 = vector.broadcast %cst_34 : f32 to vector<2x36xf32>
    %96 = arith.addf %95, %94 : vector<2x36xf32>
    %97 = arith.divf %95, %96 : vector<2x36xf32>
    %98 = vector.extract_strided_slice %91 {offsets = [0, 36], sizes = [2, 12], strides = [1, 1]} : vector<2x48xf32> to vector<2x12xf32>
    %99 = math.tanh %98 : vector<2x12xf32>
    %100 = vector.extract_strided_slice %97 {offsets = [0, 0], sizes = [2, 12], strides = [1, 1]} : vector<2x36xf32> to vector<2x12xf32>
    %101 = vector.extract_strided_slice %97 {offsets = [0, 12], sizes = [2, 12], strides = [1, 1]} : vector<2x36xf32> to vector<2x12xf32>
    %102 = vector.extract_strided_slice %97 {offsets = [0, 24], sizes = [2, 12], strides = [1, 1]} : vector<2x36xf32> to vector<2x12xf32>
    %103 = arith.mulf %101, %78 : vector<2x12xf32>
    %104 = arith.mulf %100, %99 : vector<2x12xf32>
    %105 = arith.addf %103, %104 : vector<2x12xf32>
    %106 = math.tanh %105 : vector<2x12xf32>
    %107 = arith.mulf %102, %106 : vector<2x12xf32>
    %c0_35 = arith.constant 0 : index
    %108 = arith.index_cast %86 : i32 to index
    %c0_36 = arith.constant 0 : index
    %c0_37 = arith.constant 0 : index
    %109 = vector.load %arg3[%c0_35, %108, %c0_36, %c0_37] : memref<1x8x2x12xf32, #tpu.memory_space<vmem>>, vector<1x1x2x12xf32>
    %110 = vector.shape_cast %109 : vector<1x1x2x12xf32> to vector<2x12xf32>
    %111 = vector.shape_cast %107 : vector<2x12xf32> to vector<1x1x2x12xf32>
    tpu.vector_store %arg3[%c0_35, %108, %c0_36, %c0_37], %111 {strides = array<i32>} : memref<1x8x2x12xf32, #tpu.memory_space<vmem>>, vector<1x1x2x12xf32>,
    %c4_i32 = arith.constant 4 : i32
    %c7_i32_38 = arith.constant 7 : i32
    %112 = arith.subi %c7_i32_38, %c4_i32 : i32
    %113 = arith.select %0, %112, %c4_i32 : i32
    %c0_39 = arith.constant 0 : index
    %114 = arith.index_cast %113 : i32 to index
    %c0_40 = arith.constant 0 : index
    %c0_41 = arith.constant 0 : index
    %115 = vector.load %arg1[%c0_39, %114, %c0_40, %c0_41] : memref<1x8x2x48xf32, #tpu.memory_space<vmem>>, vector<1x1x2x48xf32>
    %116 = vector.shape_cast %115 : vector<1x1x2x48xf32> to vector<2x48xf32>
    %cst_42 = arith.constant dense<0.000000e+00> : vector<2x48xf32>
    %117 = tpu.matmul %107, %2, %cst_42 {dimension_numbers = #tpu.dot_dimension_numbers<[1], [0], [0], [1], [0, 0, 1, 1], [], []>} : vector<2x12xf32>, vector<12x48xf32>, vector<2x48xf32> -> vector<2x48xf32>
    %118 = arith.addf %116, %117 : vector<2x48xf32>
    %119 = vector.extract_strided_slice %118 {offsets = [0, 0], sizes = [2, 36], strides = [1, 1]} : vector<2x48xf32> to vector<2x36xf32>
    %120 = arith.negf %119 : vector<2x36xf32>
    %121 = math.exp %120 : vector<2x36xf32>
    %cst_43 = arith.constant 1.000000e+00 : f32
    %122 = vector.broadcast %cst_43 : f32 to vector<2x36xf32>
    %123 = arith.addf %122, %121 : vector<2x36xf32>
    %124 = arith.divf %122, %123 : vector<2x36xf32>
    %125 = vector.extract_strided_slice %118 {offsets = [0, 36], sizes = [2, 12], strides = [1, 1]} : vector<2x48xf32> to vector<2x12xf32>
    %126 = math.tanh %125 : vector<2x12xf32>
    %127 = vector.extract_strided_slice %124 {offsets = [0, 0], sizes = [2, 12], strides = [1, 1]} : vector<2x36xf32> to vector<2x12xf32>
    %128 = vector.extract_strided_slice %124 {offsets = [0, 12], sizes = [2, 12], strides = [1, 1]} : vector<2x36xf32> to vector<2x12xf32>
    %129 = vector.extract_strided_slice %124 {offsets = [0, 24], sizes = [2, 12], strides = [1, 1]} : vector<2x36xf32> to vector<2x12xf32>
    %130 = arith.mulf %128, %105 : vector<2x12xf32>
    %131 = arith.mulf %127, %126 : vector<2x12xf32>
    %132 = arith.addf %130, %131 : vector<2x12xf32>
    %133 = math.tanh %132 : vector<2x12xf32>
    %134 = arith.mulf %129, %133 : vector<2x12xf32>
    %c0_44 = arith.constant 0 : index
    %135 = arith.index_cast %113 : i32 to index
    %c0_45 = arith.constant 0 : index
    %c0_46 = arith.constant 0 : index
    %136 = vector.load %arg3[%c0_44, %135, %c0_45, %c0_46] : memref<1x8x2x12xf32, #tpu.memory_space<vmem>>, vector<1x1x2x12xf32>
    %137 = vector.shape_cast %136 : vector<1x1x2x12xf32> to vector<2x12xf32>
    %138 = vector.shape_cast %134 : vector<2x12xf32> to vector<1x1x2x12xf32>
    tpu.vector_store %arg3[%c0_44, %135, %c0_45, %c0_46], %138 {strides = array<i32>} : memref<1x8x2x12xf32, #tpu.memory_space<vmem>>, vector<1x1x2x12xf32>,
    %c5_i32 = arith.constant 5 : i32
    %c7_i32_47 = arith.constant 7 : i32
    %139 = arith.subi %c7_i32_47, %c5_i32 : i32
    %140 = arith.select %0, %139, %c5_i32 : i32
    %c0_48 = arith.constant 0 : index
    %141 = arith.index_cast %140 : i32 to index
    %c0_49 = arith.constant 0 : index
    %c0_50 = arith.constant 0 : index
    %142 = vector.load %arg1[%c0_48, %141, %c0_49, %c0_50] : memref<1x8x2x48xf32, #tpu.memory_space<vmem>>, vector<1x1x2x48xf32>
    %143 = vector.shape_cast %142 : vector<1x1x2x48xf32> to vector<2x48xf32>
    %cst_51 = arith.constant dense<0.000000e+00> : vector<2x48xf32>
    %144 = tpu.matmul %134, %2, %cst_51 {dimension_numbers = #tpu.dot_dimension_numbers<[1], [0], [0], [1], [0, 0, 1, 1], [], []>} : vector<2x12xf32>, vector<12x48xf32>, vector<2x48xf32> -> vector<2x48xf32>
    %145 = arith.addf %143, %144 : vector<2x48xf32>
    %146 = vector.extract_strided_slice %145 {offsets = [0, 0], sizes = [2, 36], strides = [1, 1]} : vector<2x48xf32> to vector<2x36xf32>
    %147 = arith.negf %146 : vector<2x36xf32>
    %148 = math.exp %147 : vector<2x36xf32>
    %cst_52 = arith.constant 1.000000e+00 : f32
    %149 = vector.broadcast %cst_52 : f32 to vector<2x36xf32>
    %150 = arith.addf %149, %148 : vector<2x36xf32>
    %151 = arith.divf %149, %150 : vector<2x36xf32>
    %152 = vector.extract_strided_slice %145 {offsets = [0, 36], sizes = [2, 12], strides = [1, 1]} : vector<2x48xf32> to vector<2x12xf32>
    %153 = math.tanh %152 : vector<2x12xf32>
    %154 = vector.extract_strided_slice %151 {offsets = [0, 0], sizes = [2, 12], strides = [1, 1]} : vector<2x36xf32> to vector<2x12xf32>
    %155 = vector.extract_strided_slice %151 {offsets = [0, 12], sizes = [2, 12], strides = [1, 1]} : vector<2x36xf32> to vector<2x12xf32>
    %156 = vector.extract_strided_slice %151 {offsets = [0, 24], sizes = [2, 12], strides = [1, 1]} : vector<2x36xf32> to vector<2x12xf32>
    %157 = arith.mulf %155, %132 : vector<2x12xf32>
    %158 = arith.mulf %154, %153 : vector<2x12xf32>
    %159 = arith.addf %157, %158 : vector<2x12xf32>
    %160 = math.tanh %159 : vector<2x12xf32>
    %161 = arith.mulf %156, %160 : vector<2x12xf32>
    %c0_53 = arith.constant 0 : index
    %162 = arith.index_cast %140 : i32 to index
    %c0_54 = arith.constant 0 : index
    %c0_55 = arith.constant 0 : index
    %163 = vector.load %arg3[%c0_53, %162, %c0_54, %c0_55] : memref<1x8x2x12xf32, #tpu.memory_space<vmem>>, vector<1x1x2x12xf32>
    %164 = vector.shape_cast %163 : vector<1x1x2x12xf32> to vector<2x12xf32>
    %165 = vector.shape_cast %161 : vector<2x12xf32> to vector<1x1x2x12xf32>
    tpu.vector_store %arg3[%c0_53, %162, %c0_54, %c0_55], %165 {strides = array<i32>} : memref<1x8x2x12xf32, #tpu.memory_space<vmem>>, vector<1x1x2x12xf32>,
    %c6_i32 = arith.constant 6 : i32
    %c7_i32_56 = arith.constant 7 : i32
    %166 = arith.subi %c7_i32_56, %c6_i32 : i32
    %167 = arith.select %0, %166, %c6_i32 : i32
    %c0_57 = arith.constant 0 : index
    %168 = arith.index_cast %167 : i32 to index
    %c0_58 = arith.constant 0 : index
    %c0_59 = arith.constant 0 : index
    %169 = vector.load %arg1[%c0_57, %168, %c0_58, %c0_59] : memref<1x8x2x48xf32, #tpu.memory_space<vmem>>, vector<1x1x2x48xf32>
    %170 = vector.shape_cast %169 : vector<1x1x2x48xf32> to vector<2x48xf32>
    %cst_60 = arith.constant dense<0.000000e+00> : vector<2x48xf32>
    %171 = tpu.matmul %161, %2, %cst_60 {dimension_numbers = #tpu.dot_dimension_numbers<[1], [0], [0], [1], [0, 0, 1, 1], [], []>} : vector<2x12xf32>, vector<12x48xf32>, vector<2x48xf32> -> vector<2x48xf32>
    %172 = arith.addf %170, %171 : vector<2x48xf32>
    %173 = vector.extract_strided_slice %172 {offsets = [0, 0], sizes = [2, 36], strides = [1, 1]} : vector<2x48xf32> to vector<2x36xf32>
    %174 = arith.negf %173 : vector<2x36xf32>
    %175 = math.exp %174 : vector<2x36xf32>
    %cst_61 = arith.constant 1.000000e+00 : f32
    %176 = vector.broadcast %cst_61 : f32 to vector<2x36xf32>
    %177 = arith.addf %176, %175 : vector<2x36xf32>
    %178 = arith.divf %176, %177 : vector<2x36xf32>
    %179 = vector.extract_strided_slice %172 {offsets = [0, 36], sizes = [2, 12], strides = [1, 1]} : vector<2x48xf32> to vector<2x12xf32>
    %180 = math.tanh %179 : vector<2x12xf32>
    %181 = vector.extract_strided_slice %178 {offsets = [0, 0], sizes = [2, 12], strides = [1, 1]} : vector<2x36xf32> to vector<2x12xf32>
    %182 = vector.extract_strided_slice %178 {offsets = [0, 12], sizes = [2, 12], strides = [1, 1]} : vector<2x36xf32> to vector<2x12xf32>
    %183 = vector.extract_strided_slice %178 {offsets = [0, 24], sizes = [2, 12], strides = [1, 1]} : vector<2x36xf32> to vector<2x12xf32>
    %184 = arith.mulf %182, %159 : vector<2x12xf32>
    %185 = arith.mulf %181, %180 : vector<2x12xf32>
    %186 = arith.addf %184, %185 : vector<2x12xf32>
    %187 = math.tanh %186 : vector<2x12xf32>
    %188 = arith.mulf %183, %187 : vector<2x12xf32>
    %c0_62 = arith.constant 0 : index
    %189 = arith.index_cast %167 : i32 to index
    %c0_63 = arith.constant 0 : index
    %c0_64 = arith.constant 0 : index
    %190 = vector.load %arg3[%c0_62, %189, %c0_63, %c0_64] : memref<1x8x2x12xf32, #tpu.memory_space<vmem>>, vector<1x1x2x12xf32>
    %191 = vector.shape_cast %190 : vector<1x1x2x12xf32> to vector<2x12xf32>
    %192 = vector.shape_cast %188 : vector<2x12xf32> to vector<1x1x2x12xf32>
    tpu.vector_store %arg3[%c0_62, %189, %c0_63, %c0_64], %192 {strides = array<i32>} : memref<1x8x2x12xf32, #tpu.memory_space<vmem>>, vector<1x1x2x12xf32>,
    %c7_i32_65 = arith.constant 7 : i32
    %c7_i32_66 = arith.constant 7 : i32
    %193 = arith.subi %c7_i32_66, %c7_i32_65 : i32
    %194 = arith.select %0, %193, %c7_i32_65 : i32
    %c0_67 = arith.constant 0 : index
    %195 = arith.index_cast %194 : i32 to index
    %c0_68 = arith.constant 0 : index
    %c0_69 = arith.constant 0 : index
    %196 = vector.load %arg1[%c0_67, %195, %c0_68, %c0_69] : memref<1x8x2x48xf32, #tpu.memory_space<vmem>>, vector<1x1x2x48xf32>
    %197 = vector.shape_cast %196 : vector<1x1x2x48xf32> to vector<2x48xf32>
    %cst_70 = arith.constant dense<0.000000e+00> : vector<2x48xf32>
    %198 = tpu.matmul %188, %2, %cst_70 {dimension_numbers = #tpu.dot_dimension_numbers<[1], [0], [0], [1], [0, 0, 1, 1], [], []>} : vector<2x12xf32>, vector<12x48xf32>, vector<2x48xf32> -> vector<2x48xf32>
    %199 = arith.addf %197, %198 : vector<2x48xf32>
    %200 = vector.extract_strided_slice %199 {offsets = [0, 0], sizes = [2, 36], strides = [1, 1]} : vector<2x48xf32> to vector<2x36xf32>
    %201 = arith.negf %200 : vector<2x36xf32>
    %202 = math.exp %201 : vector<2x36xf32>
    %cst_71 = arith.constant 1.000000e+00 : f32
    %203 = vector.broadcast %cst_71 : f32 to vector<2x36xf32>
    %204 = arith.addf %203, %202 : vector<2x36xf32>
    %205 = arith.divf %203, %204 : vector<2x36xf32>
    %206 = vector.extract_strided_slice %199 {offsets = [0, 36], sizes = [2, 12], strides = [1, 1]} : vector<2x48xf32> to vector<2x12xf32>
    %207 = math.tanh %206 : vector<2x12xf32>
    %208 = vector.extract_strided_slice %205 {offsets = [0, 0], sizes = [2, 12], strides = [1, 1]} : vector<2x36xf32> to vector<2x12xf32>
    %209 = vector.extract_strided_slice %205 {offsets = [0, 12], sizes = [2, 12], strides = [1, 1]} : vector<2x36xf32> to vector<2x12xf32>
    %210 = vector.extract_strided_slice %205 {offsets = [0, 24], sizes = [2, 12], strides = [1, 1]} : vector<2x36xf32> to vector<2x12xf32>
    %211 = arith.mulf %209, %186 : vector<2x12xf32>
    %212 = arith.mulf %208, %207 : vector<2x12xf32>
    %213 = arith.addf %211, %212 : vector<2x12xf32>
    %214 = math.tanh %213 : vector<2x12xf32>
    %215 = arith.mulf %210, %214 : vector<2x12xf32>
    %c0_72 = arith.constant 0 : index
    %216 = arith.index_cast %194 : i32 to index
    %c0_73 = arith.constant 0 : index
    %c0_74 = arith.constant 0 : index
    %217 = vector.load %arg3[%c0_72, %216, %c0_73, %c0_74] : memref<1x8x2x12xf32, #tpu.memory_space<vmem>>, vector<1x1x2x12xf32>
    %218 = vector.shape_cast %217 : vector<1x1x2x12xf32> to vector<2x12xf32>
    %219 = vector.shape_cast %215 : vector<2x12xf32> to vector<1x1x2x12xf32>
    tpu.vector_store %arg3[%c0_72, %216, %c0_73, %c0_74], %219 {strides = array<i32>} : memref<1x8x2x12xf32, #tpu.memory_space<vmem>>, vector<1x1x2x12xf32>,
    %c8_i32 = arith.constant 8 : i32
    return
  }
  func.func @transform_0(%arg0: i32) -> (i32, i32, i32, i32) {
    %c0_i32 = arith.constant 0 : i32
    %c0_i32_0 = arith.constant 0 : i32
    %c0_i32_1 = arith.constant 0 : i32
    %c0_i32_2 = arith.constant 0 : i32
    return %arg0, %c0_i32, %c0_i32_0, %c0_i32_1 : i32, i32, i32, i32
  }
  func.func @transform_1(%arg0: i32) -> (i32, i32, i32) {
    %c0_i32 = arith.constant 0 : i32
    %c0_i32_0 = arith.constant 0 : i32
    %c0_i32_1 = arith.constant 0 : i32
    return %arg0, %c0_i32, %c0_i32_0 : i32, i32, i32
  }
  func.func @transform_2(%arg0: i32) -> (i32, i32, i32, i32) {
    %c0_i32 = arith.constant 0 : i32
    %c0_i32_0 = arith.constant 0 : i32
    %c0_i32_1 = arith.constant 0 : i32
    %c0_i32_2 = arith.constant 0 : i32
    return %arg0, %c0_i32, %c0_i32_0, %c0_i32_1 : i32, i32, i32, i32
  }
}

</mosaic_0001>

<bundles_post_ra>
// kernel: bilstm_forward.2
= control target key start
LH: loop header
LB: loop body
LE: loop exit
PB: predicated region body
PF: predicated region fallthrough
CT: control target
= control target key end

     0   :  { %s1361_s9 = smov 0   ;;  %s1563_s0 = inlined_call_operand.vmem [shape: f32[2,8,2,48], index: 0, kind: input, shape index: {}]   ;;  %s1564_s1 = inlined_call_operand.vmem [shape: f32[2,12,48], index: 1, kind: input, shape index: {}]   ;;  %s1565_s2 = inlined_call_operand.vmem [shape: f32[2,8,2,12], index: 2, kind: output, shape index: {}]  }
   0x1 LB: > { %s1367_s10 = sadd.s32 4294967295, %s1339_s9   ;;  %p1133_p0 = scmp.ge.s32.totalorder %s1339_s9, 1  ;;  %s1339_s9 = sphi %s1361_s9, %s12_s9  }
   0x2   : > { %p122_p1 = scmp.lt.s32.totalorder %s1339_s9, 3 }
   0x4   : > { %p123_p2 = pnand %p1133_p0, %p122_p1 }
   0x5   : > { %p149_p3 = scmp.lt.s32.totalorder (!%p123_p2), %s1367_s10, 1  ;;  %p164_p4 = scmp.eq.s32.totalorder (!%p123_p2), %s1367_s10, 1 }
   0x6   : > { %126 = sbr.rel (%p123_p2) target bundleno = 5532 (0x159c), region = 28  ;;  %s1343_s22 = smov (!%p123_p2), 92  }
   0x7   : > { %s1344_s23 = smov (!%p123_p2), 12   ;;  %s1345_s24 = smov (!%p123_p2), 104  }
   0xb   : > { %v1341_v0 = vmov 0.0   ;;  %vm1342_vm0 = vmmov 0   ;;  %s150_s11 = scalar_select %p149_p3, %s1367_s10, 1  ;;  %vm175_vm1 = vcmask 1043456   ;;  %vm279_vm2 = vcmask 91136  }
   0xc   : > { %1200 = vmatprep.subr.mxu0 %v1341_v0  ;;  %1204 = vmatprep.mubr.msk.f32.mxu0 %vm1342_vm0, %v1341_v0  ;;  %s1410_s16 = scalar_select %p164_p4, 7, 0  ;;  %vm171_vm3 = vcmask 97280  }
   0xd   : > { %1207 = vmatprep.subr.mxu1 %v1341_v0  ;;  %1211 = vmatprep.mubr.msk.f32.mxu1 %vm1342_vm0, %v1341_v0  ;;  %s1379_s12 = sshll.u32 %s150_s11, 4 }
   0xe   : > { %s158_s15 = scalar_lea.vmem %s1564_s1, %s1379_s12  ;;  %s1416_s19 = scalar_lea.vmem %s1563_s0, %s1379_s12 }
   0xf   : > { %v1385_v1 = vld [vmem:[%s158_s15 + $0x8] sm:$0xf]  ;;  %v1387_v2 = vld [vmem:[%s158_s15] sm:$0xff]  ;;  %s1140_s20 = sshll.u32 %s1410_s16, 1  ;;  %s1430_s27 = scalar_lea.vmem %s1565_s2, %s1379_s12 }
  0x10   : > { %1201 = vmatpush3.msk.msra.mxu0 %vm175_vm1, %v1385_v1  ;;  %1208 = vmatpush3.msk.msra.mxu1 %vm175_vm1, %v1385_v1  ;;  %s169_s21 = scalar_lea.vmem %s1416_s19, %s1140_s20  ;;  %s278_s28 = scalar_lea.vmem %s1430_s27, %s1140_s20 }
  0x11   : > { %1202 = vmatprep.subr.mxu0 %v1341_v0  ;;  %1209 = vmatprep.subr.mxu1 %v1341_v0  ;;  %v170_v3 = vld [vmem:[%s169_s21] sm:$0x3]  ;;  %s1446_s29 = scalar_select %p164_p4, 6, 1 }
  0x12   : > { %1203 = vmatpush3.msra.mxu0 %v1387_v2  ;;  %1210 = vmatpush3.msra.mxu1 %v1387_v2  ;;  %s1466_s5 = scalar_select %p164_p4, 5, 2 }
  0x13   : > { %1205 = vmatmul.mubr.f32.vlgmr.msra.gmra.mxu0 %v1341_v0  ;;  %1214 = vmatprep.subr.mxu0 %v1341_v0  ;;  %s1143_s30 = sshll.u32 %s1446_s29, 1 }
  0x14   : > { %1215 = vmatpush3.msk.msra.mxu0 %vm175_vm1, %v1385_v1  ;;  %1218 = vmatprep.mubr.msk.f32.mxu0 %vm1342_vm0, %v1341_v0  ;;  %s283_s3 = scalar_lea.vmem %s1416_s19, %s1143_s30  ;;  %s386_s4 = scalar_lea.vmem %s1430_s27, %s1143_s30 }
  0x15   : > { %1216 = vmatprep.subr.mxu0 %v1341_v0  ;;  %1221 = vmatprep.subr.mxu1 %v1341_v0  ;;  %v284_v21 = vld [vmem:[%s283_s3] sm:$0x3]  ;;  %s1147_s6 = sshll.u32 %s1466_s5, 1 }
  0x16   : > { %1217 = vmatpush3.msra.mxu0 %v1387_v2  ;;  %s390_s7 = scalar_lea.vmem %s1416_s19, %s1147_s6  ;;  %s493_s8 = scalar_lea.vmem %s1430_s27, %s1147_s6 }
  0x17   : > { %1228 = vmatprep.subr.mxu0 %v1341_v0  ;;  %v391_v39 = vld [vmem:[%s390_s7] sm:$0x3]  ;;  %s1486_s11 = scalar_select %p164_p4, 4, 3 }
  0x18   : > { %s1505_s15 = scalar_select %p164_p4, 3, 4 }
  0x19   : > { %s1151_s12 = sshll.u32 %s1486_s11, 1 }
  0x1a   : > { %s497_s13 = scalar_lea.vmem %s1416_s19, %s1151_s12  ;;  %s600_s14 = scalar_lea.vmem %s1430_s27, %s1151_s12 }
  0x1b   : > { %v498_v57 = vld [vmem:[%s497_s13] sm:$0x3]  ;;  %s1155_s16 = sshll.u32 %s1505_s15, 1 }
  0x1c   : > { %s604_s17 = scalar_lea.vmem %s1416_s19, %s1155_s16  ;;  %s707_s18 = scalar_lea.vmem %s1430_s27, %s1155_s16 }
  0x1d   : > { %s1524_s20 = scalar_select %p164_p4, 2, 5 }
  0x1f   : > { %s1159_s21 = sshll.u32 %s1524_s20, 1 }
  0x20   : > { %s711_s25 = scalar_lea.vmem %s1416_s19, %s1159_s21  ;;  %s814_s26 = scalar_lea.vmem %s1430_s27, %s1159_s21 }
  0xd3   : > { %v245_v4 = vpop.f32.mrf.mxu0 }
  0xd4   : > { %v249_v5 = vadd.f32 %v245_v4, %v170_v3 }
  0xd5   : > { %v1206_v6 = vpop.f32.mrf.mxu0 }
  0xd6   : > { %1269 = vtanh.f32 %v249_v5  ;;  %v1142_v8 = vmul.f32 -1.442695, %v249_v5 }
  0xd8   : > { %1271 = vpow2.f32 %v1142_v8 }
  0xe3   : > { %v1270_v7 = vpop.eup %1269 }
  0xe4   : > { %259 = vrot.lane.b32.xlu0 %v1270_v7, %s1343_s22 }
  0xe5   : > { %v1272_v9 = vpop.eup %1271 }
  0xe6   : > { %v253_v10 = vadd.f32 1.0, %v1272_v9 }
  0xe8   : > { %1273 = vrcp.f32 %v253_v10 }
  0xf5   : > { %v1274_v11 = vpop.eup %1273 }
  0xf6   : > { %v257_v14 = vmul.f32 0.0, %v1274_v11 }
 0x156   : > { %v260_v12 = vpop.permute.xlu0 %259 }
 0x157   : > { %v262_v13 = vmul.f32 %v1274_v11, %v260_v12 }
 0x159   : > { %264 = vrot.lane.b32.xlu0 %v262_v13, %s1344_s23 }
 0x1cb   : > { %v265_v15 = vpop.permute.xlu0 %264 }
 0x1cc   : > { %v267_v16 = vadd.f32 %v265_v15, %v257_v14  ;;  %v605_v14 = vld [vmem:[%s604_s17] sm:$0x3] }
 0x1ce   : > { %1275 = vtanh.f32 %v267_v16 }
 0x1db   : > { %v1276_v17 = vpop.eup %1275 }
 0x1dc   : > { %270 = vrot.lane.b32.xlu1 %v1276_v17, %s1344_s23 }
 0x24e   : > { %v271_v18 = vpop.permute.xlu1 %270 }
 0x24f   : > { %v273_v19 = vmul.f32 %v1274_v11, %v271_v18 }
 0x251   : > { %275 = vrot.lane.b32.xlu1 %v273_v19, %s1345_s24 }
 0x2c3   : > { %v276_v20 = vpop.permute.xlu1 %275 }
 0x2c4   : > { %280 = vst.msk [vmem:[%s278_s28] sm:$0x3] %vm279_vm2, %v276_v20  ;;  %1212 = vmatmul.mubr.msk.f32.vlgmr.msra.gmra.mxu1 %vm171_vm3, %v276_v20  ;;  %s1537_s28 = scalar_select %p164_p4, 1, 6 }
 0x2c5   : > { %1222 = vmatpush3.msk.msra.mxu1 %vm175_vm1, %v1385_v1  ;;  %1225 = vmatprep.mubr.msk.f32.mxu1 %vm1342_vm0, %v1341_v0 }
 0x2c6   : > { %1223 = vmatprep.subr.mxu1 %v1341_v0  ;;  %s1163_s29 = sshll.u32 %s1537_s28, 1 }
 0x2c7   : > { %1224 = vmatpush3.msra.mxu1 %v1387_v2  ;;  %s818_s30 = scalar_lea.vmem %s1416_s19, %s1163_s29  ;;  %s921_s3 = scalar_lea.vmem %s1430_s27, %s1163_s29 }
 0x2c8   : > { %1235 = vmatprep.subr.mxu1 %v1341_v0 }
 0x384   : > { %v353_v22 = vpop.f32.mrf.mxu1 }
 0x385   : > { %v357_v23 = vadd.f32 %v353_v22, %v284_v21 }
 0x386   : > { %v1213_v24 = vpop.f32.mrf.mxu1 }
 0x387   : > { %1277 = vtanh.f32 %v357_v23  ;;  %v1146_v26 = vmul.f32 -1.442695, %v357_v23 }
 0x389   : > { %1279 = vpow2.f32 %v1146_v26 }
 0x394   : > { %v1278_v25 = vpop.eup %1277 }
 0x395   : > { %367 = vrot.lane.b32.xlu0 %v1278_v25, %s1343_s22 }
 0x396   : > { %v1280_v27 = vpop.eup %1279 }
 0x397   : > { %v361_v28 = vadd.f32 1.0, %v1280_v27 }
 0x399   : > { %1281 = vrcp.f32 %v361_v28 }
 0x3a6   : > { %v1282_v29 = vpop.eup %1281 }
 0x3a7   : > { %v365_v32 = vmul.f32 %v1282_v29, %v267_v16 }
 0x407   : > { %v368_v30 = vpop.permute.xlu0 %367 }
 0x408   : > { %v370_v31 = vmul.f32 %v1282_v29, %v368_v30 }
 0x40a   : > { %372 = vrot.lane.b32.xlu1 %v370_v31, %s1344_s23 }
 0x47c   : > { %v373_v33 = vpop.permute.xlu1 %372 }
 0x47d   : > { %v375_v34 = vadd.f32 %v373_v33, %v365_v32  ;;  %v712_v32 = vld [vmem:[%s711_s25] sm:$0x3] }
 0x47f   : > { %1283 = vtanh.f32 %v375_v34 }
 0x48c   : > { %v1284_v35 = vpop.eup %1283 }
 0x48d   : > { %378 = vrot.lane.b32.xlu0 %v1284_v35, %s1344_s23 }
 0x4ff   : > { %v379_v36 = vpop.permute.xlu0 %378 }
 0x500   : > { %v381_v37 = vmul.f32 %v1282_v29, %v379_v36 }
 0x502   : > { %383 = vrot.lane.b32.xlu1 %v381_v37, %s1345_s24 }
 0x574   : > { %v384_v38 = vpop.permute.xlu1 %383 }
 0x575   : > { %387 = vst.msk [vmem:[%s386_s4] sm:$0x3] %vm279_vm2, %v384_v38  ;;  %1219 = vmatmul.mubr.msk.f32.vlgmr.msra.gmra.mxu0 %vm171_vm3, %v384_v38  ;;  %s1550_s4 = scalar_select %p164_p4, 0, 7 }
 0x576   : > { %1229 = vmatpush3.msk.msra.mxu0 %vm175_vm1, %v1385_v1  ;;  %1232 = vmatprep.mubr.msk.f32.mxu0 %vm1342_vm0, %v1341_v0 }
 0x577   : > { %1230 = vmatprep.subr.mxu0 %v1341_v0  ;;  %s1167_s5 = sshll.u32 %s1550_s4, 1 }
 0x578   : > { %1231 = vmatpush3.msra.mxu0 %v1387_v2  ;;  %s925_s6 = scalar_lea.vmem %s1416_s19, %s1167_s5  ;;  %s1028_s10 = scalar_lea.vmem %s1430_s27, %s1167_s5 }
 0x579   : > { %1242 = vmatprep.subr.mxu0 %v1341_v0 }
 0x635   : > { %v460_v40 = vpop.f32.mrf.mxu0 }
 0x636   : > { %v464_v41 = vadd.f32 %v460_v40, %v391_v39 }
 0x637   : > { %v1220_v42 = vpop.f32.mrf.mxu0 }
 0x638   : > { %1285 = vtanh.f32 %v464_v41  ;;  %v1150_v44 = vmul.f32 -1.442695, %v464_v41 }
 0x63a   : > { %1287 = vpow2.f32 %v1150_v44 }
 0x645   : > { %v1286_v43 = vpop.eup %1285 }
 0x646   : > { %474 = vrot.lane.b32.xlu0 %v1286_v43, %s1343_s22 }
 0x647   : > { %v1288_v45 = vpop.eup %1287 }
 0x648   : > { %v468_v46 = vadd.f32 1.0, %v1288_v45 }
 0x64a   : > { %1289 = vrcp.f32 %v468_v46 }
 0x657   : > { %v1290_v47 = vpop.eup %1289 }
 0x658   : > { %v472_v50 = vmul.f32 %v1290_v47, %v375_v34 }
 0x6b8   : > { %v475_v48 = vpop.permute.xlu0 %474 }
 0x6b9   : > { %v477_v49 = vmul.f32 %v1290_v47, %v475_v48 }
 0x6bb   : > { %479 = vrot.lane.b32.xlu1 %v477_v49, %s1344_s23 }
 0x72d   : > { %v480_v51 = vpop.permute.xlu1 %479 }
 0x72e   : > { %v482_v52 = vadd.f32 %v480_v51, %v472_v50 }
 0x730   : > { %1291 = vtanh.f32 %v482_v52 }
 0x73d   : > { %v1292_v53 = vpop.eup %1291 }
 0x73e   : > { %485 = vrot.lane.b32.xlu0 %v1292_v53, %s1344_s23 }
 0x7b0   : > { %v486_v54 = vpop.permute.xlu0 %485 }
 0x7b1   : > { %v488_v55 = vmul.f32 %v1290_v47, %v486_v54  ;;  %v819_v47 = vld [vmem:[%s818_s30] sm:$0x3] }
 0x7b3   : > { %490 = vrot.lane.b32.xlu1 %v488_v55, %s1345_s24 }
 0x825   : > { %v491_v56 = vpop.permute.xlu1 %490 }
 0x826   : > { %494 = vst.msk [vmem:[%s493_s8] sm:$0x3] %vm279_vm2, %v491_v56  ;;  %1226 = vmatmul.mubr.msk.f32.vlgmr.msra.gmra.mxu1 %vm171_vm3, %v491_v56 }
 0x827   : > { %1236 = vmatpush3.msk.msra.mxu1 %vm175_vm1, %v1385_v1  ;;  %1239 = vmatprep.mubr.msk.f32.mxu1 %vm1342_vm0, %v1341_v0 }
 0x828   : > { %1237 = vmatprep.subr.mxu1 %v1341_v0 }
 0x829   : > { %1238 = vmatpush3.msra.mxu1 %v1387_v2 }
 0x82a   : > { %1249 = vmatprep.subr.mxu1 %v1341_v0 }
 0x8e6   : > { %v567_v58 = vpop.f32.mrf.mxu1 }
 0x8e7   : > { %v571_v59 = vadd.f32 %v567_v58, %v498_v57 }
 0x8e8   : > { %v1227_v60 = vpop.f32.mrf.mxu1 }
 0x8e9   : > { %1293 = vtanh.f32 %v571_v59  ;;  %v1154_v62 = vmul.f32 -1.442695, %v571_v59 }
 0x8eb   : > { %1295 = vpow2.f32 %v1154_v62 }
 0x8f6   : > { %v1294_v61 = vpop.eup %1293 }
 0x8f7   : > { %581 = vrot.lane.b32.xlu0 %v1294_v61, %s1343_s22 }
 0x8f8   : > { %v1296_v63 = vpop.eup %1295 }
 0x8f9   : > { %v575_v3 = vadd.f32 1.0, %v1296_v63 }
 0x8fb   : > { %1297 = vrcp.f32 %v575_v3 }
 0x908   : > { %v1298_v4 = vpop.eup %1297 }
 0x909   : > { %v579_v7 = vmul.f32 %v1298_v4, %v482_v52 }
 0x969   : > { %v582_v5 = vpop.permute.xlu0 %581 }
 0x96a   : > { %v584_v6 = vmul.f32 %v1298_v4, %v582_v5 }
 0x96c   : > { %586 = vrot.lane.b32.xlu1 %v584_v6, %s1344_s23 }
 0x9de   : > { %v587_v8 = vpop.permute.xlu1 %586 }
 0x9df   : > { %v589_v9 = vadd.f32 %v587_v8, %v579_v7 }
 0x9e1   : > { %1299 = vtanh.f32 %v589_v9 }
 0x9ee   : > { %v1300_v10 = vpop.eup %1299 }
 0x9ef   : > { %592 = vrot.lane.b32.xlu0 %v1300_v10, %s1344_s23 }
 0xa61   : > { %v593_v11 = vpop.permute.xlu0 %592 }
 0xa62   : > { %v595_v12 = vmul.f32 %v1298_v4, %v593_v11  ;;  %v926_v4 = vld [vmem:[%s925_s6] sm:$0x3] }
 0xa64   : > { %597 = vrot.lane.b32.xlu1 %v595_v12, %s1345_s24 }
 0xad6   : > { %v598_v13 = vpop.permute.xlu1 %597 }
 0xad7   : > { %601 = vst.msk [vmem:[%s600_s14] sm:$0x3] %vm279_vm2, %v598_v13  ;;  %1233 = vmatmul.mubr.msk.f32.vlgmr.msra.gmra.mxu0 %vm171_vm3, %v598_v13 }
 0xad8   : > { %1243 = vmatpush3.msk.msra.mxu0 %vm175_vm1, %v1385_v1  ;;  %1246 = vmatprep.mubr.msk.f32.mxu0 %vm1342_vm0, %v1341_v0 }
 0xad9   : > { %1244 = vmatprep.subr.mxu0 %v1341_v0 }
 0xada   : > { %1245 = vmatpush3.msra.mxu0 %v1387_v2 }
 0xb97   : > { %v674_v15 = vpop.f32.mrf.mxu0 }
 0xb98   : > { %v678_v16 = vadd.f32 %v674_v15, %v605_v14 }
 0xb99   : > { %v1234_v17 = vpop.f32.mrf.mxu0 }
 0xb9a   : > { %1301 = vtanh.f32 %v678_v16  ;;  %v1158_v19 = vmul.f32 -1.442695, %v678_v16 }
 0xb9c   : > { %1303 = vpow2.f32 %v1158_v19 }
 0xba7   : > { %v1302_v18 = vpop.eup %1301 }
 0xba8   : > { %688 = vrot.lane.b32.xlu0 %v1302_v18, %s1343_s22 }
 0xba9   : > { %v1304_v20 = vpop.eup %1303 }
 0xbaa   : > { %v682_v21 = vadd.f32 1.0, %v1304_v20 }
 0xbac   : > { %1305 = vrcp.f32 %v682_v21 }
 0xbb9   : > { %v1306_v22 = vpop.eup %1305 }
 0xbba   : > { %v686_v25 = vmul.f32 %v1306_v22, %v589_v9 }
 0xc1a   : > { %v689_v23 = vpop.permute.xlu0 %688 }
 0xc1b   : > { %v691_v24 = vmul.f32 %v1306_v22, %v689_v23 }
 0xc1d   : > { %693 = vrot.lane.b32.xlu1 %v691_v24, %s1344_s23 }
 0xc8f   : > { %v694_v26 = vpop.permute.xlu1 %693 }
 0xc90   : > { %v696_v27 = vadd.f32 %v694_v26, %v686_v25 }
 0xc92   : > { %1307 = vtanh.f32 %v696_v27 }
 0xc9f   : > { %v1308_v28 = vpop.eup %1307 }
 0xca0   : > { %699 = vrot.lane.b32.xlu0 %v1308_v28, %s1344_s23 }
 0xd12   : > { %v700_v29 = vpop.permute.xlu0 %699 }
 0xd13   : > { %v702_v30 = vmul.f32 %v1306_v22, %v700_v29 }
 0xd15   : > { %704 = vrot.lane.b32.xlu1 %v702_v30, %s1345_s24 }
 0xd87   : > { %v705_v31 = vpop.permute.xlu1 %704 }
 0xd88   : > { %708 = vst.msk [vmem:[%s707_s18] sm:$0x3] %vm279_vm2, %v705_v31  ;;  %1240 = vmatmul.mubr.msk.f32.vlgmr.msra.gmra.mxu1 %vm171_vm3, %v705_v31 }
 0xd89   : > { %1250 = vmatpush3.msk.msra.mxu1 %vm175_vm1, %v1385_v1  ;;  %1253 = vmatprep.mubr.msk.f32.mxu1 %vm1342_vm0, %v1341_v0 }
 0xd8a   : > { %1251 = vmatprep.subr.mxu1 %v1341_v0 }
 0xd8b   : > { %1252 = vmatpush3.msra.mxu1 %v1387_v2 }
 0xe48   : > { %v781_v33 = vpop.f32.mrf.mxu1 }
 0xe49   : > { %v785_v34 = vadd.f32 %v781_v33, %v712_v32 }
 0xe4a   : > { %v1241_v35 = vpop.f32.mrf.mxu1 }
 0xe4b   : > { %1309 = vtanh.f32 %v785_v34  ;;  %v1162_v1 = vmul.f32 -1.442695, %v785_v34 }
 0xe4d   : > { %1311 = vpow2.f32 %v1162_v1 }
 0xe58   : > { %v1310_v36 = vpop.eup %1309 }
 0xe59   : > { %795 = vrot.lane.b32.xlu0 %v1310_v36, %s1343_s22 }
 0xe5a   : > { %v1312_v37 = vpop.eup %1311 }
 0xe5b   : > { %v789_v0 = vadd.f32 1.0, %v1312_v37 }
 0xe5d   : > { %1313 = vrcp.f32 %v789_v0 }
 0xe6a   : > { %v1314_v2 = vpop.eup %1313 }
 0xe6b   : > { %v793_v40 = vmul.f32 %v1314_v2, %v696_v27 }
 0xecb   : > { %v796_v38 = vpop.permute.xlu0 %795 }
 0xecc   : > { %v798_v39 = vmul.f32 %v1314_v2, %v796_v38 }
 0xece   : > { %800 = vrot.lane.b32.xlu1 %v798_v39, %s1344_s23 }
 0xf40   : > { %v801_v41 = vpop.permute.xlu1 %800 }
 0xf41   : > { %v803_v42 = vadd.f32 %v801_v41, %v793_v40 }
 0xf43   : > { %1315 = vtanh.f32 %v803_v42 }
 0xf50   : > { %v1316_v43 = vpop.eup %1315 }
 0xf51   : > { %806 = vrot.lane.b32.xlu0 %v1316_v43, %s1344_s23 }
 0xfc3   : > { %v807_v44 = vpop.permute.xlu0 %806 }
 0xfc4   : > { %v809_v45 = vmul.f32 %v1314_v2, %v807_v44 }
 0xfc6   : > { %811 = vrot.lane.b32.xlu1 %v809_v45, %s1345_s24 }
0x1038   : > { %v812_v46 = vpop.permute.xlu1 %811 }
0x1039   : > { %815 = vst.msk [vmem:[%s814_s26] sm:$0x3] %vm279_vm2, %v812_v46  ;;  %1247 = vmatmul.mubr.msk.f32.vlgmr.msra.gmra.mxu0 %vm171_vm3, %v812_v46 }
0x10f9   : > { %v888_v48 = vpop.f32.mrf.mxu0 }
0x10fa   : > { %v892_v49 = vadd.f32 %v888_v48, %v819_v47 }
0x10fb   : > { %v1248_v50 = vpop.f32.mrf.mxu0 }
0x10fc   : > { %1317 = vtanh.f32 %v892_v49  ;;  %v1166_v52 = vmul.f32 -1.442695, %v892_v49 }
0x10fe   : > { %1319 = vpow2.f32 %v1166_v52 }
0x1109   : > { %v1318_v51 = vpop.eup %1317 }
0x110a   : > { %902 = vrot.lane.b32.xlu0 %v1318_v51, %s1343_s22 }
0x110b   : > { %v1320_v53 = vpop.eup %1319 }
0x110c   : > { %v896_v54 = vadd.f32 1.0, %v1320_v53 }
0x110e   : > { %1321 = vrcp.f32 %v896_v54 }
0x111b   : > { %v1322_v55 = vpop.eup %1321 }
0x111c   : > { %v900_v58 = vmul.f32 %v1322_v55, %v803_v42 }
0x117c   : > { %v903_v56 = vpop.permute.xlu0 %902 }
0x117d   : > { %v905_v57 = vmul.f32 %v1322_v55, %v903_v56 }
0x117f   : > { %907 = vrot.lane.b32.xlu1 %v905_v57, %s1344_s23 }
0x11f1   : > { %v908_v59 = vpop.permute.xlu1 %907 }
0x11f2   : > { %v910_v60 = vadd.f32 %v908_v59, %v900_v58 }
0x11f4   : > { %1323 = vtanh.f32 %v910_v60 }
0x1201   : > { %v1324_v61 = vpop.eup %1323 }
0x1202   : > { %913 = vrot.lane.b32.xlu0 %v1324_v61, %s1344_s23 }
0x1274   : > { %v914_v62 = vpop.permute.xlu0 %913 }
0x1275   : > { %v916_v63 = vmul.f32 %v1322_v55, %v914_v62 }
0x1277   : > { %918 = vrot.lane.b32.xlu1 %v916_v63, %s1345_s24 }
0x12e9   : > { %v919_v3 = vpop.permute.xlu1 %918 }
0x12ea   : > { %922 = vst.msk [vmem:[%s921_s3] sm:$0x3] %vm279_vm2, %v919_v3  ;;  %1254 = vmatmul.mubr.msk.f32.vlgmr.msra.gmra.mxu1 %vm171_vm3, %v919_v3 }
0x13aa   : > { %v995_v5 = vpop.f32.mrf.mxu1 }
0x13ab   : > { %v999_v6 = vadd.f32 %v995_v5, %v926_v4 }
0x13ac   : > { %v1255_v7 = vpop.f32.mrf.mxu1 }
0x13ad   : > { %1325 = vtanh.f32 %v999_v6  ;;  %v1170_v9 = vmul.f32 -1.442695, %v999_v6 }
0x13af   : > { %1327 = vpow2.f32 %v1170_v9 }
0x13ba   : > { %v1326_v8 = vpop.eup %1325 }
0x13bb   : > { %1009 = vrot.lane.b32.xlu0 %v1326_v8, %s1343_s22 }
0x13bc   : > { %v1328_v10 = vpop.eup %1327 }
0x13bd   : > { %v1003_v11 = vadd.f32 1.0, %v1328_v10 }
0x13bf   : > { %1329 = vrcp.f32 %v1003_v11 }
0x13cc   : > { %v1330_v12 = vpop.eup %1329 }
0x13cd   : > { %v1007_v15 = vmul.f32 %v1330_v12, %v910_v60 }
0x142d   : > { %v1010_v13 = vpop.permute.xlu0 %1009 }
0x142e   : > { %v1012_v14 = vmul.f32 %v1330_v12, %v1010_v13 }
0x1430   : > { %1014 = vrot.lane.b32.xlu1 %v1012_v14, %s1344_s23 }
0x14a2   : > { %v1015_v16 = vpop.permute.xlu1 %1014 }
0x14a3   : > { %v1017_v17 = vadd.f32 %v1015_v16, %v1007_v15 }
0x14a5   : > { %1331 = vtanh.f32 %v1017_v17 }
0x14b2   : > { %v1332_v18 = vpop.eup %1331 }
0x14b3   : > { %1020 = vrot.lane.b32.xlu0 %v1332_v18, %s1344_s23 }
0x1525   : > { %v1021_v19 = vpop.permute.xlu0 %1020 }
0x1526   : > { %v1023_v20 = vmul.f32 %v1330_v12, %v1021_v19 }
0x1528   : > { %1025 = vrot.lane.b32.xlu1 %v1023_v20, %s1345_s24 }
0x159a   : > { %v1026_v21 = vpop.permute.xlu1 %1025 }
0x159b   : > { %1029 = vst.msk [vmem:[%s1028_s10] sm:$0x3] %vm279_vm2, %v1026_v21 }
0x159c PF: > { %s12_s9 = sadd.s32 1, %s1339_s9  }
0x159d   : > { %p9_p5 = scmp.ge.s32.totalorder %s12_s9, 4  }
0x159f   :  { %11 = sbr.rel (!%p9_p5) target bundleno = 1 (0x1), region = 77 }

</bundles_post_ra>
